<compile_context>
chip_gen: v7x
topology: tpu7x:2x2x1
jax: 0.10.0
libtpu: 0.0.40
codegen_flags: <defaults>
</compile_context>

<pallas_src>
import functools
import math

import jax
import jax.numpy as jnp
from jax.experimental import pallas as pl
from jax.experimental.pallas import tpu as pltpu


def attention_kernel(x_ref, w_ref, att_ref, wts_ref):
    x = x_ref[...].astype(jnp.float32)                      # (bb, T, 2H)
    w = w_ref[...].astype(jnp.float32)                      # (1, 2H)

    # --- score projection: Linear(2H -> 1), lane reduce over 2H --------------
    s = jnp.sum(x * w[None, :, :], axis=-1)                 # (bb, T)
    # nn.Linear's scalar bias is a constant shift and cancels in softmax(dim=1).

    # --- softmax over the sequence axis (f32 elementwise) --------------------
    s_max = jnp.max(s, axis=-1, keepdims=True)
    e = jnp.exp(s - s_max)
    denom = jnp.sum(e, axis=-1, keepdims=True)
    p = e * pl.reciprocal(denom, approx=False)              # (bb, T)

    # --- attention-weighted encoding: f32 VPU mul + reduce over T ------------
    att = jnp.sum(p[:, :, None] * x, axis=1)                # (bb, 2H)

    att_ref[...] = att.astype(att_ref.dtype)
    wts_ref[...] = p.astype(wts_ref.dtype)


def _pick_block_b(B, T, H2, in_itemsize, vmem_budget_bytes=48 << 20):
    """Largest batch tile whose double-buffered input fits the VMEM budget."""
    per_row_bytes = T * H2 * in_itemsize
    max_rows = max(1, vmem_budget_bytes // (2 * per_row_bytes))
    divisors = [d for d in range(1, B + 1) if B % d == 0 and d <= max_rows]
    if not divisors:
        return 1
    mult8 = [d for d in divisors if d % 8 == 0]
    block_b = max(mult8) if mult8 else max(divisors)
    # v7x: keep >=2 grid steps (2 TensorCores) when the batch is large enough.
    if block_b == B and B >= 16 and (B // 2) % 8 == 0:
        block_b = B // 2
    return block_b


def attention_forward(encoder_outputs, attn_weight, attn_bias=None, *, block_b=None):
    """Pallas equivalent of Attention.forward.

    encoder_outputs: (B, T, 2H)   -- f32 or bf16 (upcast to f32 in-kernel)
    attn_weight:     (1, 2H)      -- nn.Linear(2H, 1).weight
    attn_bias:       (1,)         -- unused: a scalar bias cancels in softmax(dim=1)
    Returns (attention_weighted_encoding (B, 2H), attention_weights (B, T, 1)).
    """
    del attn_bias  # softmax is shift-invariant; a scalar bias has no effect.
    B, T, H2 = encoder_outputs.shape
    in_itemsize = jnp.dtype(encoder_outputs.dtype).itemsize
    if block_b is None:
        block_b = _pick_block_b(B, T, H2, in_itemsize)
    assert B % block_b == 0
    grid = (B // block_b,)

    # Per-step VMEM footprint (double-buffered in/out); raise the scoped
    # default only when actually needed (16 MiB v5e / 32 MiB v6e-v7x).
    footprint = 2 * (block_b * T * H2 * in_itemsize      # input tile
                     + block_b * H2 * 4                  # attended tile
                     + block_b * T * 4)                  # weights tile
    compiler_kwargs = dict(dimension_semantics=("parallel",))
    if footprint > (30 << 20):
        compiler_kwargs["vmem_limit_bytes"] = min(footprint + (8 << 20), 112 << 20)

    att, wts = pl.pallas_call(
        attention_kernel,
        out_shape=(
            jax.ShapeDtypeStruct((B, H2), jnp.float32),
            jax.ShapeDtypeStruct((B, T), jnp.float32),
        ),
        grid=grid,
        in_specs=[
            pl.BlockSpec((block_b, T, H2), lambda i: (i, 0, 0)),
            pl.BlockSpec((1, H2), lambda i: (0, 0)),
        ],
        out_specs=(
            pl.BlockSpec((block_b, H2), lambda i: (i, 0)),
            pl.BlockSpec((block_b, T), lambda i: (i, 0)),
        ),
        compiler_params=pltpu.CompilerParams(**compiler_kwargs),
    )(encoder_outputs, attn_weight)

    # Free metadata reshape outside the kernel.
    return att, wts[:, :, None]


if __name__ == "__main__":
    batch, seq_len, hidden_dim = 2, 8, 32
    H2 = 2 * hidden_dim

    key = jax.random.PRNGKey(0)
    kx, kw, kb = jax.random.split(key, 3)
    encoder_outputs = jax.random.normal(kx, (batch, seq_len, H2), jnp.float32)
    bound = 1.0 / math.sqrt(H2)
    attn_weight = jax.random.uniform(kw, (1, H2), jnp.float32, -bound, bound)
    attn_bias = jax.random.uniform(kb, (1,), jnp.float32, -bound, bound)

    attended, weights = attention_forward(encoder_outputs, attn_weight, attn_bias)
    jax.block_until_ready((attended, weights))

    # Pure-JAX reference mirroring the PyTorch module (with the bias).
    ref_scores = encoder_outputs @ attn_weight[0] + attn_bias[0]      # (B, T)
    ref_weights = jax.nn.softmax(ref_scores, axis=1)[:, :, None]      # (B, T, 1)
    ref_attended = jnp.sum(ref_weights * encoder_outputs, axis=1)     # (B, 2H)

    assert attended.shape == (batch, H2)
    assert weights.shape == (batch, seq_len, 1)
    assert bool(jnp.all(jnp.isfinite(attended)))
    assert bool(jnp.all(jnp.isfinite(weights)))
    assert bool(jnp.allclose(weights, ref_weights, atol=1e-5, rtol=1e-5))
    # Weighted sum is now all-f32 on the VPU -> tight tolerance.
    assert bool(jnp.allclose(attended, ref_attended, atol=1e-5, rtol=1e-5))
    print("KERNEL_OK")
</pallas_src>

<mosaic_0001>
module attributes {stable_mosaic.version = 11 : i64} {
  func.func @attention_kernel(%arg0: i32, %arg1: memref<2x8x64xf32, #tpu.memory_space<vmem>>, %arg2: memref<1x64xf32, #tpu.memory_space<vmem>>, %arg3: memref<2x64xf32, #tpu.memory_space<vmem>>, %arg4: memref<2x8xf32, #tpu.memory_space<vmem>>) attributes {dimension_semantics = [#tpu.dimension_semantics<parallel>], iteration_bounds = array<i64: 1>, scalar_prefetch = 0 : i64, scratch_operands = 0 : i64, tpu.core_type = #tpu.core_type<tc>, window_params = [{transform_indices = @transform_0, window_bounds = array<i64: 2, 8, 64>}, {pipeline_mode = #tpu.pipeline_mode<synchronous>, transform_indices = @transform_1, window_bounds = array<i64: 1, 64>}, {transform_indices = @transform_2, window_bounds = array<i64: 2, 64>}, {transform_indices = @transform_3, window_bounds = array<i64: 2, 8>}]} {
    %c0 = arith.constant 0 : index
    %c0_0 = arith.constant 0 : index
    %c0_1 = arith.constant 0 : index
    %0 = vector.load %arg1[%c0, %c0_0, %c0_1] : memref<2x8x64xf32, #tpu.memory_space<vmem>>, vector<2x8x64xf32>
    %c0_2 = arith.constant 0 : index
    %c0_3 = arith.constant 0 : index
    %1 = vector.load %arg2[%c0_2, %c0_3] : memref<1x64xf32, #tpu.memory_space<vmem>>, vector<1x64xf32>
    %2 = vector.shape_cast %1 : vector<1x64xf32> to vector<1x1x64xf32>
    %3 = vector.broadcast %2 : vector<1x1x64xf32> to vector<2x8x64xf32>
    %4 = arith.mulf %0, %3 : vector<2x8x64xf32>
    %cst = arith.constant dense<0.000000e+00> : vector<2x8xf32>
    %5 = vector.multi_reduction <add>, %4, %cst [2] : vector<2x8x64xf32> to vector<2x8xf32>
    %cst_4 = arith.constant dense<0xFF800000> : vector<2xf32>
    %6 = vector.multi_reduction <maximumf>, %5, %cst_4 [1] : vector<2x8xf32> to vector<2xf32>
    %7 = vector.shape_cast %6 : vector<2xf32> to vector<2x1xf32>
    %8 = vector.broadcast %7 : vector<2x1xf32> to vector<2x8xf32>
    %9 = arith.subf %5, %8 : vector<2x8xf32>
    %10 = math.exp %9 : vector<2x8xf32>
    %cst_5 = arith.constant dense<0.000000e+00> : vector<2xf32>
    %11 = vector.multi_reduction <add>, %10, %cst_5 [1] : vector<2x8xf32> to vector<2xf32>
    %12 = vector.shape_cast %11 : vector<2xf32> to vector<2x1xf32>
    %13 = tpu.reciprocal %12 : vector<2x1xf32> -> vector<2x1xf32>
    %14 = vector.broadcast %13 : vector<2x1xf32> to vector<2x8xf32>
    %15 = arith.mulf %10, %14 : vector<2x8xf32>
    %16 = vector.shape_cast %15 : vector<2x8xf32> to vector<2x8x1xf32>
    %17 = vector.broadcast %16 : vector<2x8x1xf32> to vector<2x8x64xf32>
    %18 = arith.mulf %17, %0 : vector<2x8x64xf32>
    %cst_6 = arith.constant dense<0.000000e+00> : vector<2x64xf32>
    %19 = vector.multi_reduction <add>, %18, %cst_6 [1] : vector<2x8x64xf32> to vector<2x64xf32>
    %c0_7 = arith.constant 0 : index
    %c0_8 = arith.constant 0 : index
    %20 = vector.load %arg3[%c0_7, %c0_8] : memref<2x64xf32, #tpu.memory_space<vmem>>, vector<2x64xf32>
    tpu.vector_store %arg3[%c0_7, %c0_8], %19 {strides = array<i32>} : memref<2x64xf32, #tpu.memory_space<vmem>>, vector<2x64xf32>,
    %c0_9 = arith.constant 0 : index
    %c0_10 = arith.constant 0 : index
    %21 = vector.load %arg4[%c0_9, %c0_10] : memref<2x8xf32, #tpu.memory_space<vmem>>, vector<2x8xf32>
    tpu.vector_store %arg4[%c0_9, %c0_10], %15 {strides = array<i32>} : memref<2x8xf32, #tpu.memory_space<vmem>>, vector<2x8xf32>,
    return
  }
  func.func @transform_0(%arg0: i32) -> (i32, i32, i32) {
    %c0_i32 = arith.constant 0 : i32
    %c0_i32_0 = arith.constant 0 : i32
    %c0_i32_1 = arith.constant 0 : i32
    return %arg0, %c0_i32, %c0_i32_0 : i32, i32, i32
  }
  func.func @transform_1(%arg0: i32) -> (i32, i32) {
    %c0_i32 = arith.constant 0 : i32
    %c0_i32_0 = arith.constant 0 : i32
    %c0_i32_1 = arith.constant 0 : i32
    return %c0_i32, %c0_i32_0 : i32, i32
  }
  func.func @transform_2(%arg0: i32) -> (i32, i32) {
    %c0_i32 = arith.constant 0 : i32
    %c0_i32_0 = arith.constant 0 : i32
    return %arg0, %c0_i32 : i32, i32
  }
  func.func @transform_3(%arg0: i32) -> (i32, i32) {
    %c0_i32 = arith.constant 0 : i32
    %c0_i32_0 = arith.constant 0 : i32
    return %arg0, %c0_i32 : i32, i32
  }
}

</mosaic_0001>

<bundles_post_ra>
// kernel: tpu_custom_call.1
= control target key start
LH: loop header
LB: loop body
LE: loop exit
PB: predicated region body
PF: predicated region fallthrough
CT: control target
= control target key end

     0   :  { %9 = vsyncpa [#allocation3], 0  ;;  %s353_s0 = inlined_call_operand.hbm [shape: f32[2,8,64], index: 0, kind: input, shape index: {}]   ;;  %s354_s1 = inlined_call_operand.vmem [shape: f32[1,64], index: 1, kind: input, shape index: {}]   ;;  %s355_s2 = inlined_call_operand.hbm [shape: f32[2,64], index: 2, kind: output, shape index: {0}]   ;;  %s356_s3 = inlined_call_operand.hbm [shape: f32[2,8], index: 3, kind: output, shape index: {1}]  }
   0x1   :  { %10 = vsyncpa [#allocation4], 0 }
   0x2   :  { %11 = vsyncpa [#allocation7], 0  ;;  %s277_s12 = smov [#allocation2]   ;;  %s205_s16 = scalar_lea.hbm %s353_s0, 256 }
   0x3   :  { %s17_s13 = sshll.u32 %s277_s12, 4  ;;  %p206_p0 = scmp.ne.s32.totalorder %s353_s0, %s205_s16  ;;  %s18_s13 = int_to_ptr.vmem [resolvable:$true] %s17_s13 }
   0x4   :  { %p209_p1 = scmp.lt.u32.totalorder %s205_s16, %s353_s0 }
   0x6   :  { %p211_p2 = pnand %p209_p1, %p206_p0 }
   0x8   :  { %214 = shalt.err (!%p211_p2)
}
   0x9   :  { %s215_s21 = scalar_lea.vmem %s18_s13, 256  ;;  %p220_p4 = scmp.lt.s32.totalorder %s18_s13, %s18_s13 }
   0xa   :  { %p216_p3 = scmp.ne.s32.totalorder %s18_s13, %s215_s21  ;;  %p221_p5 = scmp.lt.s32.totalorder %s215_s21, %s215_s21 }
   0xc   :  { %p222_p6 = por %p221_p5, %p220_p4 }
   0xe   :  { %p223_p7 = pnand %p222_p6, %p216_p3 }
  0x10   :  { %226 = shalt.err (!%p223_p7)
}
  0x11   :  { %s278_s22 = smov 128   ;;  %s279_s23 = smov 8  }
  0x12   :  { %23 = dma.hbm_to_vmem [thread:$0]  %s353_s0, 256, %s18_s13, [#allocation3], %s278_s22, %s278_s22, %s279_s23  }
  0x13   :  { %271 = dma.done.wait [#allocation3], 256  }
  0x14   :  { %272 = vsyncadd [#allocation3], 4294967040  ;;  %v29_v0 = vld [vmem:[#allocation2] sm:$0xff]  ;;  %vm40_vm0 = vcmask 523264   ;;  %v30_v2 = vld [vmem:[#allocation2 + $0x8] sm:$0xff]  ;;  %v49_v7 = vlaneseq  ;;  %vm59_vm1 = vcmask 1041409  }
  0x15   :  { %v190_v1 = vld [vmem:[%s354_s1] ss:$0 sm:$0xff]  ;;  %vm62_vm2 = vcmask 58368   ;;  %v280_v17 = vmov 0   ;;  %s281_s0 = smov [#allocation6]  }
  0x16   :  { %v38_v3 = vmul.f32 %v190_v1, %v29_v0  ;;  %v39_v4 = vmul.f32 %v190_v1, %v30_v2  ;;  %v50_v8 = vand.u32 127, %v49_v7  ;;  %v52_v9 = vshrl.u32 %v49_v7, 7  ;;  %198 = vset.pattern.permute.xlu0 %v280_v17  ;;  %197 = vset.pattern.permute.xlu1 %v280_v17  ;;  %s177_s1 = sshll.u32 %s281_s0, 4  ;;  %s178_s1 = int_to_ptr.vmem [resolvable:$true] %s177_s1 }
  0x17   :  { %s227_s28 = scalar_lea.vmem %s178_s1, 32  ;;  %p232_p9 = scmp.lt.s32.totalorder %s178_s1, %s178_s1 }
  0x18   :  { %v41_v5 = vsel %vm40_vm0, %v38_v3, 0.0  ;;  %v44_v6 = vsel %vm40_vm0, %v39_v4, 0.0  ;;  %v53_v11 = vsub.s32 %v50_v8, %v52_v9  ;;  %v69_v18 = vsub.s32 0, %v52_v9  ;;  %p228_p8 = scmp.ne.s32.totalorder %s178_s1, %s227_s28  ;;  %p233_p10 = scmp.lt.s32.totalorder %s227_s28, %s227_s28 }
  0x19   :  { %42 = vadd.xlane.f32.xlu0 %v41_v5  ;;  %v73_v19 = vsub.s32 1, %v52_v9 }
  0x1a   :  { %p234_p11 = por %p233_p10, %p232_p9 }
  0x1c   :  { %p235_p12 = pnand %p234_p11, %p228_p8 }
  0x1d   :  { %45 = vadd.xlane.f32.xlu0 %v44_v6 }
  0xa6   :  { %v43_v10 = vpop.xlane.xlu0 %42 }
  0xa7   :  { %v54_v13 = vrot.slane %v43_v10, %v53_v11 }
  0xaa   :  { %v46_v12 = vpop.xlane.xlu0 %45 }
  0xab   :  { %v58_v14 = vrot.slane %v46_v12, %v53_v11 }
  0xad   :  { %v60_v15 = vsel %vm59_vm1, %v58_v14, %v54_v13 }
  0xae   :  { %v63_v16 = vsel %vm62_vm2, %v60_v15, -inf }
  0xaf   :  { %64 = vmax.xlane.f32.xlu1 %v63_v16 }
 0x13c   :  { %v65_v20 = vpop.xlane.xlu1 %64 }
 0x13d   :  { %v70_v21 = vrot.slane %v65_v20, %v69_v18  ;;  %v74_v22 = vrot.slane %v65_v20, %v73_v19 }
 0x13f   :  { %v77_v23 = vsub.f32 %v43_v10, %v70_v21  ;;  %v78_v24 = vsub.f32 %v46_v12, %v74_v22 }
 0x141   :  { %v79_v25 = vmul.f32 1.442695, %v77_v23  ;;  %v81_v26 = vmul.f32 1.442695, %v78_v24 }
 0x143   :  { %199 = vpow2.f32 %v79_v25 }
 0x144   :  { %201 = vpow2.f32 %v81_v26 }
 0x14d   :  { %v200_v27 = vpop.eup %199 }
 0x14e   :  { %v202_v28 = vpop.eup %201  ;;  %86 = vperm.xlu1 %197, %v200_v27  }
 0x14f   :  { %89 = vperm.xlu0 %198, %v202_v28  }
 0x1cd   :  { %v87_v29 = vpop.permute.xlu1 %86 }
 0x1ce   :  { %v90_v30 = vpop.permute.xlu0 %89  ;;  %v94_v31 = vrot.slane %v87_v29, %v53_v11 }
 0x1cf   :  { %v98_v32 = vrot.slane %v90_v30, %v53_v11 }
 0x1d1   :  { %v99_v33 = vsel %vm59_vm1, %v98_v32, %v94_v31 }
 0x1d2   :  { %v101_v34 = vsel %vm62_vm2, %v99_v33, 0.0 }
 0x1d3   :  { %102 = vadd.xlane.f32.xlu1 %v101_v34 }
 0x260   :  { %v103_v35 = vpop.xlane.xlu1 %102 }
 0x261   :  { %203 = vrcp.f32 %v103_v35 }
 0x26b   :  { %v204_v36 = vpop.eup %203 }
 0x26c   :  { %v109_v37 = vrot.slane %v204_v36, %v69_v18  ;;  %v113_v39 = vrot.slane %v204_v36, %v73_v19 }
 0x26e   :  { %v116_v38 = vmul.f32 %v200_v27, %v109_v37  ;;  %v117_v40 = vmul.f32 %v202_v28, %v113_v39 }
 0x270   :  { %120 = vperm.xlu0 %198, %v116_v38  }
 0x274   :  { %125 = vperm.xlu0 %198, %v117_v40  }
 0x2ef   :  { %v121_v41 = vpop.permute.xlu0 %120 }
 0x2f0   :  { %v128_v42 = vmul.f32 %v121_v41, %v29_v0  ;;  %v153_v46 = vrot.slane %v121_v41, %v53_v11 }
 0x2f2   :  { %v130_v43 = vsel %vm40_vm0, %v128_v42, 0.0 }
 0x2f3   :  { %v131_v44 = vrot.slane %v130_v43, 4  ;;  %v126_v45 = vpop.permute.xlu0 %125 }
 0x2f4   :  { %v129_v47 = vmul.f32 %v126_v45, %v30_v2  ;;  %v157_v48 = vrot.slane %v126_v45, %v53_v11 }
 0x2f5   :  { %v132_v49 = vadd.f32 %v131_v44, %v130_v43 }
 0x2f6   :  { %v137_v50 = vsel %vm40_vm0, %v129_v47, 0.0  ;;  %v158_v51 = vsel %vm59_vm1, %v157_v48, %v153_v46 }
 0x2f7   :  { %v133_v52 = vrot.slane %v132_v49, 2  ;;  %v138_v53 = vrot.slane %v137_v50, 4  ;;  %160 = vst.msk [vmem:[#allocation6] sm:$0x3] %vm62_vm2, %v158_v51 }
 0x2f8   :  { %238 = shalt.err (!%p235_p12)
}
 0x2f9   :  { %s239_s4 = scalar_lea.hbm %s356_s3, 32 }
 0x2fa   :  { %p240_p13 = scmp.ne.s32.totalorder %s356_s3, %s239_s4  ;;  %p243_p0 = scmp.lt.u32.totalorder %s239_s4, %s356_s3 }
 0x2fc   :  { %p245_p1 = pnand %p243_p0, %p240_p13 }
 0x2fe   :  { %248 = shalt.err (!%p245_p1)
}
 0x2ff   :  { %180 = dma.vmem_to_hbm [thread:$0]  %s178_s1, 32, %s356_s3, [#allocation7]   ;;  %v134_v54 = vadd.f32 %v133_v52, %v132_v49  ;;  %v139_v55 = vadd.f32 %v138_v53, %v137_v50  ;;  %vm148_vm3 = vcmask 517120  }
 0x300   :  { %s282_s11 = smov [#allocation5]  }
 0x301   :  { %v140_v56 = vrot.slane %v139_v55, 2  ;;  %v135_v57 = vrot.slane %v134_v54, 1  ;;  %s167_s12 = sshll.u32 %s282_s11, 4  ;;  %s168_s12 = int_to_ptr.vmem [resolvable:$true] %s167_s12 }
 0x302   :  { %s249_s13 = scalar_lea.vmem %s168_s12, 32  ;;  %p254_p3 = scmp.lt.s32.totalorder %s168_s12, %s168_s12 }
 0x303   :  { %v141_v58 = vadd.f32 %v140_v56, %v139_v55  ;;  %v136_v61 = vadd.f32 %v135_v57, %v134_v54  ;;  %p250_p2 = scmp.ne.s32.totalorder %s168_s12, %s249_s13  ;;  %p255_p4 = scmp.lt.s32.totalorder %s249_s13, %s249_s13 }
 0x305   :  { %v142_v59 = vrot.slane %v141_v58, 1  ;;  %p256_p5 = por %p255_p4, %p254_p3 }
 0x307   :  { %v143_v60 = vadd.f32 %v142_v59, %v141_v58  ;;  %p257_p6 = pnand %p256_p5, %p250_p2 }
 0x309   :  { %v146_v62 = vsel %vm59_vm1, %v143_v60, %v136_v61 }
 0x30a   :  { %149 = vst.msk [vmem:[#allocation5] sm:$0x3] %vm148_vm3, %v146_v62 }
 0x30b   :  { %260 = shalt.err (!%p257_p6)
}
 0x30c   :  { %s261_s15 = scalar_lea.hbm %s355_s2, 32 }
 0x30d   :  { %p262_p7 = scmp.ne.s32.totalorder %s355_s2, %s261_s15  ;;  %p265_p8 = scmp.lt.u32.totalorder %s261_s15, %s355_s2 }
 0x30f   :  { %p267_p9 = pnand %p265_p8, %p262_p7 }
 0x311   :  { %270 = shalt.err (!%p267_p9)
}
 0x312   :  { %170 = dma.vmem_to_hbm [thread:$0]  %s168_s12, 32, %s355_s2, [#allocation4]  }
 0x313   :  { %273 = dma.done.wait [#allocation4], 32  }
 0x314   :  { %274 = vsyncadd [#allocation4], 4294967264 }
 0x315   :  { %275 = dma.done.wait [#allocation7], 32  }
 0x316   :  { %276 = vsyncadd [#allocation7], 4294967264 }
 0x317   :  { %187 = vsyncpa [#allocation3], 1 }
 0x318   :  { %188 = vsyncpa [#allocation4], 1 }
 0x319   :  { %189 = vsyncpa [#allocation7], 1 }

</bundles_post_ra>
